<compile_context>
chip_gen: v6e
topology: v6e:2x2x1
jax: 0.10.0
libtpu: 0.0.40
codegen_flags: <defaults>
</compile_context>

<pallas_src>
import numpy as np
import jax
import jax.numpy as jnp
from jax.experimental import pallas as pl
from jax.experimental.pallas import tpu as pltpu


def _make_fourier_kernel(freqs, use_double_angle, reseed_every=4):
    """freqs: python scalars baked into the kernel as compile-time constants."""
    n_f = len(freqs)
    freqs = [float(f) for f in freqs]

    def kernel(x_ref, o_ref):
        # x_ref: (1, cb, Lb) VMEM ; o_ref: (1, 2*n_f, cb, Lb) VMEM
        x = x_ref[0].astype(jnp.float32)
        out_dt = o_ref.dtype
        s = c = None
        for fi in range(n_f):
            if (not use_double_angle) or (fi % reseed_every == 0):
                theta = x * jnp.float32(freqs[fi])
                s = jnp.sin(theta)
                c = jnp.cos(theta)
            else:
                # step == 1 -> freq doubles each octave: double-angle recurrence
                # shares the single range reduction done at the reseed octave.
                s, c = 2.0 * s * c, 1.0 - 2.0 * s * s
            # full lane-dense, sublane-aligned slab stores (unmasked vst)
            o_ref[0, fi] = s.astype(out_dt)
            o_ref[0, n_f + fi] = c.astype(out_dt)

    return kernel


def _choose_tiles(B, C, L, n_f, itemsize, vmem_limit):
    """Pick (cb, Lb) so double-buffered in+out blocks (+f32 temps) fit in VMEM."""
    per_elem = 2 * (1 + 2 * n_f) * itemsize + 16       # dbl-buffered in/out + f32 temps
    budget = max(128, int(0.70 * vmem_limit) // per_elem)
    sub = max(8, 32 // itemsize)                       # dtype-native sublane multiple

    if C * L <= budget:
        cb, Lb = C, L                                  # full dims, grid over B only
    else:
        cb_max = budget // max(L, 1)
        if cb_max >= sub:
            cb, Lb = min(C, (cb_max // sub) * sub), L  # tile C, keep L lane-dense
        else:
            cb = min(C, sub)                           # tile both C and L
            Lb = min(L, max(128, (budget // max(cb, 1)) // 128 * 128))

    # Avoid a 1-step grid for non-tiny problems (megacore split + DMA overlap).
    if B * pl.cdiv(C, cb) * pl.cdiv(L, Lb) == 1 and C * L * itemsize > (256 << 10):
        if C >= 2 * sub:
            cb = (((C + 1) // 2) + sub - 1) // sub * sub
        elif L >= 256:
            Lb = (((L + 1) // 2) + 127) // 128 * 128
    return cb, Lb


def fourier_features_pallas(x, first=5.0, last=6.0, step=1.0):
    """Matches FourierFeatures.forward for x with ndim >= 2."""
    assert x.ndim >= 2
    exps = np.arange(first, last + 1e-8, step)
    freqs = (2.0 ** exps) * 2.0 * np.pi                # compile-time constants
    n_f = len(freqs)
    use_double_angle = n_f > 1 and np.allclose(np.diff(exps), 1.0)

    B, C = int(x.shape[0]), int(x.shape[1])
    spatial = x.shape[2:]
    L = int(np.prod(spatial)) if spatial else 1
    xf = x.reshape(B, C, L)                            # contiguous reshape (free)

    itemsize = jnp.dtype(x.dtype).itemsize
    try:
        phys_vmem = int(pltpu.get_tpu_info().vmem_capacity_bytes)
    except Exception:
        phys_vmem = 64 << 20                           # conservative (v7x per-TC)
    vmem_limit = min(32 << 20, phys_vmem // 2)

    cb, Lb = _choose_tiles(B, C, L, n_f, itemsize, vmem_limit)
    grid = (B, pl.cdiv(C, cb), pl.cdiv(L, Lb))

    out = pl.pallas_call(
        _make_fourier_kernel(freqs, use_double_angle),
        out_shape=jax.ShapeDtypeStruct((B, 2 * n_f, C, L), x.dtype),
        grid=grid,
        in_specs=[pl.BlockSpec((1, cb, Lb), lambda b, ci, li: (b, ci, li))],
        out_specs=pl.BlockSpec((1, 2 * n_f, cb, Lb),
                               lambda b, ci, li: (b, 0, ci, li)),
        compiler_params=pltpu.CompilerParams(
            dimension_semantics=("parallel", "parallel", "parallel"),
            vmem_limit_bytes=vmem_limit),
    )(xf)

    # Kernel already wrote PyTorch channel order ((s*F + f) major, c minor):
    # (B, 2F, C, L) -> (B, 2F*C, *spatial) is a contiguous reshape, no transpose.
    return out.reshape(B, 2 * n_f * C, *spatial)


def fourier_features_ref(x, first=5.0, last=6.0, step=1.0):
    """Pure-JAX reference mirroring the PyTorch module, for correctness check."""
    exps = np.arange(first, last + 1e-8, step)
    freqs = jnp.asarray((2.0 ** exps) * 2.0 * np.pi, dtype=x.dtype)
    freqs = freqs.reshape((-1,) + (1,) * (x.ndim - 1))          # (F, 1, ..., 1)
    feats = freqs * x[:, None]                                   # (B, F, C, *spatial)
    feats = feats.reshape(x.shape[0], -1, *x.shape[2:])          # (B, F*C, *spatial)
    return jnp.concatenate([jnp.sin(feats), jnp.cos(feats)], axis=1)


if __name__ == "__main__":
    B, C, H, W = 2, 4, 16, 16
    key = jax.random.PRNGKey(0)
    x = jax.random.normal(key, (B, C, H, W), dtype=jnp.float32)

    out = jax.block_until_ready(fourier_features_pallas(x))

    ref = fourier_features_ref(x)
    F = 2  # arange(5.0, 6.0+eps, 1.0) -> two frequencies
    assert out.shape == (B, 2 * F * C, H, W), out.shape
    # tolerance covers sin/cos range-reduction differences at args ~ 2^6 * 2*pi * |x|
    assert jnp.allclose(out, ref, atol=5e-3, rtol=1e-3), "mismatch vs JAX reference"
    print("KERNEL_OK")
</pallas_src>

<mosaic_0001>
module attributes {stable_mosaic.version = 11 : i64} {
  func.func @kernel(%arg0: i32, %arg1: i32, %arg2: i32, %arg3: memref<1x4x256xf32, #tpu.memory_space<vmem>>, %arg4: memref<1x4x4x256xf32, #tpu.memory_space<vmem>>) attributes {dimension_semantics = [#tpu.dimension_semantics<parallel>, #tpu.dimension_semantics<parallel>, #tpu.dimension_semantics<parallel>], iteration_bounds = array<i64: 2, 1, 1>, scalar_prefetch = 0 : i64, scratch_operands = 0 : i64, tpu.core_type = #tpu.core_type<tc>, window_params = [{transform_indices = @transform_0, window_bounds = array<i64: 1, 4, 256>}, {transform_indices = @transform_1, window_bounds = array<i64: 1, 4, 4, 256>}]} {
    %c0 = arith.constant 0 : index
    %c0_0 = arith.constant 0 : index
    %c0_1 = arith.constant 0 : index
    %0 = vector.load %arg3[%c0, %c0_0, %c0_1] : memref<1x4x256xf32, #tpu.memory_space<vmem>>, vector<1x4x256xf32>
    %1 = vector.shape_cast %0 : vector<1x4x256xf32> to vector<4x256xf32>
    %cst = arith.constant 201.061935 : f32
    %2 = vector.broadcast %cst : f32 to vector<4x256xf32>
    %3 = arith.mulf %1, %2 : vector<4x256xf32>
    %4 = math.sin %3 : vector<4x256xf32>
    %5 = math.cos %3 : vector<4x256xf32>
    %c0_2 = arith.constant 0 : index
    %c0_3 = arith.constant 0 : index
    %c0_4 = arith.constant 0 : index
    %c0_5 = arith.constant 0 : index
    %6 = vector.load %arg4[%c0_2, %c0_3, %c0_4, %c0_5] : memref<1x4x4x256xf32, #tpu.memory_space<vmem>>, vector<1x1x4x256xf32>
    %7 = vector.shape_cast %6 : vector<1x1x4x256xf32> to vector<4x256xf32>
    %8 = vector.shape_cast %4 : vector<4x256xf32> to vector<1x1x4x256xf32>
    tpu.vector_store %arg4[%c0_2, %c0_3, %c0_4, %c0_5], %8 {strides = array<i32>} : memref<1x4x4x256xf32, #tpu.memory_space<vmem>>, vector<1x1x4x256xf32>,
    %c0_6 = arith.constant 0 : index
    %c2 = arith.constant 2 : index
    %c0_7 = arith.constant 0 : index
    %c0_8 = arith.constant 0 : index
    %9 = vector.load %arg4[%c0_6, %c2, %c0_7, %c0_8] : memref<1x4x4x256xf32, #tpu.memory_space<vmem>>, vector<1x1x4x256xf32>
    %10 = vector.shape_cast %9 : vector<1x1x4x256xf32> to vector<4x256xf32>
    %11 = vector.shape_cast %5 : vector<4x256xf32> to vector<1x1x4x256xf32>
    tpu.vector_store %arg4[%c0_6, %c2, %c0_7, %c0_8], %11 {strides = array<i32>} : memref<1x4x4x256xf32, #tpu.memory_space<vmem>>, vector<1x1x4x256xf32>,
    %cst_9 = arith.constant 2.000000e+00 : f32
    %12 = vector.broadcast %cst_9 : f32 to vector<4x256xf32>
    %13 = arith.mulf %12, %4 : vector<4x256xf32>
    %14 = arith.mulf %13, %5 : vector<4x256xf32>
    %cst_10 = arith.constant 2.000000e+00 : f32
    %15 = vector.broadcast %cst_10 : f32 to vector<4x256xf32>
    %16 = arith.mulf %15, %4 : vector<4x256xf32>
    %17 = arith.mulf %16, %4 : vector<4x256xf32>
    %cst_11 = arith.constant 1.000000e+00 : f32
    %18 = vector.broadcast %cst_11 : f32 to vector<4x256xf32>
    %19 = arith.subf %18, %17 : vector<4x256xf32>
    %c0_12 = arith.constant 0 : index
    %c1 = arith.constant 1 : index
    %c0_13 = arith.constant 0 : index
    %c0_14 = arith.constant 0 : index
    %20 = vector.load %arg4[%c0_12, %c1, %c0_13, %c0_14] : memref<1x4x4x256xf32, #tpu.memory_space<vmem>>, vector<1x1x4x256xf32>
    %21 = vector.shape_cast %20 : vector<1x1x4x256xf32> to vector<4x256xf32>
    %22 = vector.shape_cast %14 : vector<4x256xf32> to vector<1x1x4x256xf32>
    tpu.vector_store %arg4[%c0_12, %c1, %c0_13, %c0_14], %22 {strides = array<i32>} : memref<1x4x4x256xf32, #tpu.memory_space<vmem>>, vector<1x1x4x256xf32>,
    %c0_15 = arith.constant 0 : index
    %c3 = arith.constant 3 : index
    %c0_16 = arith.constant 0 : index
    %c0_17 = arith.constant 0 : index
    %23 = vector.load %arg4[%c0_15, %c3, %c0_16, %c0_17] : memref<1x4x4x256xf32, #tpu.memory_space<vmem>>, vector<1x1x4x256xf32>
    %24 = vector.shape_cast %23 : vector<1x1x4x256xf32> to vector<4x256xf32>
    %25 = vector.shape_cast %19 : vector<4x256xf32> to vector<1x1x4x256xf32>
    tpu.vector_store %arg4[%c0_15, %c3, %c0_16, %c0_17], %25 {strides = array<i32>} : memref<1x4x4x256xf32, #tpu.memory_space<vmem>>, vector<1x1x4x256xf32>,
    return
  }
  func.func @transform_0(%arg0: i32, %arg1: i32, %arg2: i32) -> (i32, i32, i32) {
    %c0_i32 = arith.constant 0 : i32
    return %arg0, %arg1, %arg2 : i32, i32, i32
  }
  func.func @transform_1(%arg0: i32, %arg1: i32, %arg2: i32) -> (i32, i32, i32, i32) {
    %c0_i32 = arith.constant 0 : i32
    %c0_i32_0 = arith.constant 0 : i32
    return %arg0, %c0_i32, %arg1, %arg2 : i32, i32, i32, i32
  }
}

</mosaic_0001>

<bundles_post_ra>
// kernel: tpu_custom_call.1
= control target key start
LH: loop header
LB: loop body
LE: loop exit
PB: predicated region body
PF: predicated region fallthrough
CT: control target
= control target key end

     0   :  { %6 = vsyncpa [#allocation3], 0  ;;  %s904_s0 = inlined_call_operand.hbm [shape: f32[2,4,256], index: 0, kind: input, shape index: {}]   ;;  %s905_s1 = inlined_call_operand.hbm [shape: f32[2,4,4,256], index: 1, kind: output, shape index: {}]  }
   0x1   :  { %8 = vsyncpa [#allocation3 + $0x1], 0 }
   0x2   :  { %9 = vsyncpa [#allocation4], 0 }
   0x3   :  { %11 = vsyncpa [#allocation4 + $0x1], 0  ;;  %s734_s6 = smov 0   ;;  %s736_s7 = smov 0  }
   0x4   :  { %s738_s8 = smov 0   ;;  %s740_s9 = smov 0  }
   0x5   :  { %s742_s10 = smov 0   ;;  %s744_s11 = smov 0  }
   0x6 LB: > { %s498_s12 = sadd.s32 4294967295, %s712_s11   ;;  %s499_s13 = sadd.s32 4294967294, %s712_s11   ;;  %s712_s11 = sphi %s744_s11, %s17_s11   ;;  %s708_s10 = sphi %s742_s10, %s917_s10   ;;  %s704_s9 = sphi %s740_s9, %s916_s9   ;;  %s700_s8 = sphi %s738_s8, %s915_s8   ;;  %s696_s7 = sphi %s736_s7, %s914_s7   ;;  %s692_s6 = sphi %s734_s6, %s913_s6  }
   0x7   : > { %s36_s14 = sadd.s32 1, %s708_s10  ;;  %s47_s15 = sadd.s32 1, %s700_s8 }
   0x8   : > { %p38_p0 = scmp.ge.s32.totalorder %s36_s14, 2  ;;  %p54_p1 = scmp.ne.s32.totalorder %s700_s8, %s696_s7 }
   0x9   : > { %p55_p2 = scmp.eq.s32.totalorder %s712_s11, 0  ;;  %p60_p3 = scmp.ne.s32.totalorder %s696_s7, %s692_s6 }
   0xa   : > { %s919_s14 = smov (%p38_p0, %s36_s14), 0  ;;  %p61_p5 = scmp.eq.s32.totalorder %s498_s12, 0 }
   0xb   : > { %p775_p4 = por %p55_p2, %p54_p1  ;;  %s40_s17 = ssub.s32 %s708_s10, %s919_s14 }
   0xc   : > { %p88_p6 = scmp.eq.s32.totalorder %s498_s12, 1  ;;  %p45_p7 = scmp.eq.s32.totalorder %s40_s17, 0 }
   0xd   : > { %p781_p8 = por %p61_p5, %p60_p3  ;;  %p94_p10 = scmp.eq.s32.totalorder %s499_s13, 1 }
   0xe   : > { %p785_p9 = por %p88_p6, %p54_p1  ;;  %p542_p13 = scmp.lt.s32.totalorder %s712_s11, 2 }
   0xf   : > { %s790_s20 = scalar_select %p45_p7, %s700_s8, %s47_s15  }
  0x10   : > { %p792_p11 = por %p94_p10, %p60_p3  ;;  %s114_s22 = sand.u32 1, %s700_s8  }
  0x11   : > { %s502_s23 = sshll.u32 %s114_s22, 3  ;;  %s524_s24 = sshll.u32 %s708_s10, 7 }
  0x12   : > { %s909_s21 = scalar_select %p792_p11, 1, 0 }
  0x13   : > { %s128_s27 = scalar_lea.hbm %s904_s0, %s524_s24  ;;  %s118_s28 = scalar_lea.vmem [#allocation2], %s502_s23 }
  0x14   : > { %s130_s29 = sshll.u32 %s118_s28, 4  ;;  %p805_p0 = pnand %p542_p13, %p775_p4  ;;  %s131_s29 = int_to_ptr.vmem [resolvable:$true] %s130_s29 }
  0x15   : > { %p505_p1 = scmp.ge.s32.totalorder %s712_s11, 1  ;;  %p135_p2 = scmp.lt.s32.totalorder %s712_s11, 3 }
  0x16   : > { %s115_s2 = scalar_lea.sflag [#allocation3], %s114_s22  ;;  %p606_p3 = pneg %p805_p0 }
  0x17   : > { %s617_s3 = scalar_lea.vmem %s131_s29, 128  ;;  %s714_s4 = smov [#allocation2]  }
  0x18   : > { %p618_p5 = scmp.ne.s32.totalorder %s131_s29, %s617_s3  ;;  %s622_s5 = sshll.u32 %s714_s4, 4  ;;  %s623_s5 = int_to_ptr.vmem [resolvable:$false] %s622_s5 }
  0x19   : > { %s624_s12 = scalar_lea.vmem %s623_s5, 256  ;;  %p625_p10 = scmp.lt.s32.totalorder %s131_s29, %s623_s5 }
  0x1a   : > { %p620_p6 = pnand %p618_p5, %p606_p3  ;;  %p626_p12 = scmp.lt.s32.totalorder %s624_s12, %s617_s3 }
  0x1c   : > { %p621_p7 = pneg %p620_p6  ;;  %p627_p4 = por %p626_p12, %p625_p10 }
  0x1e   : > { %p628_p13 = pnand %p627_p4, %p621_p7 }
  0x20   : > { %631 = shalt.err (!%p628_p13)
}
  0x21   : > { %537 = dma.hbm_to_vmem [thread:$0]  (!%p805_p0), %s128_s27, 128, %s131_s29, %s115_s2  }
  0x22   : > { %p136_p11 = pnand %p505_p1, %p135_p2 }
  0x23   : > { %s820_s13 = sand.u32 (!%p136_p11), 1, %s696_s7  }
  0x24   : > { %139 = sbr.rel (%p136_p11) target bundleno = 148 (0x94), region = 24  ;;  %s506_s15 = sshll.u32 (!%p136_p11), %s820_s13, 3 }
  0x25   : > { %s142_s16 = scalar_lea.sflag (!%p136_p11), [#allocation3], %s820_s13  ;;  %s145_s17 = scalar_lea.vmem (!%p136_p11), [#allocation2], %s506_s15 }
  0x29   : > { %683 = dma.done.wait (%p781_p8), %s142_s16, 128  }
  0x2a   : > { %685 = vsyncadd (%p781_p8), %s142_s16, 4294967168  ;;  %v166_v0 = vld [vmem:[%s145_s17] sm:$0xff]  ;;  %v715_v13 = vmov 683565275   ;;  %v716_v15 = vmov 2475754826  }
  0x2b   : > { %v828_v1 = vmul.f32 201.06194, %v166_v0  ;;  %v717_v17 = vmov 2131351028   ;;  %v718_v19 = vmov 2102212464  }
  0x2c   : > { %v719_v21 = vmov 920167782   ;;  %v720_v28 = vmov 1326507024   ;;  %s507_s18 = sshll.u32 %s820_s13, 5  ;;  %s525_s24 = sshll.u32 %s704_s9, 9 }
  0x2d   : > { %v171_v2 = vand.u32 2139095040, %v828_v1  ;;  %v168_v4 = vand.u32 2147483647, %v828_v1  ;;  %vm170_vm7 = vcmp.lt.s32.totalorder %v828_v1, 0  ;;  %vm260_vm15 = vweird.f32 %v828_v1  ;;  %s163_s22 = scalar_lea.vmem [#allocation5], %s507_s18  ;;  %s856_s27 = scalar_lea.hbm %s905_s1, %s525_s24 }
  0x2e   : > { %s404_s23 = sshll.u32 %s163_s22, 4  ;;  %s387_s28 = scalar_lea.sflag [#allocation4], %s820_s13  ;;  %s851_s23 = int_to_ptr.vmem [resolvable:$true] %s404_s23 }
  0x2f   : > { %v172_v3 = vshrl.u32 %v171_v2, 23  ;;  %v175_v7 = vand.u32 8388607, %v168_v4  ;;  %vm169_vm8 = vcmp.le.f32.partialorder %v168_v4, 0.7853982  ;;  %s632_s29 = scalar_lea.vmem %s851_s23, 512 }
  0x30   : > { %p633_p8 = scmp.ne.s32.totalorder %s851_s23, %s632_s29  ;;  %s721_s9 = smov [#allocation5]  }
  0x31   : > { %v508_v5 = vadd.s32 4294967169, %v172_v3  ;;  %v176_v10 = vor.u32 8388608, %v175_v7  ;;  %s636_s30 = sshll.u32 %s721_s9, 4  ;;  %s637_s30 = int_to_ptr.vmem [resolvable:$false] %s636_s30 }
  0x32   : > { %p634_p11 = pnand %p633_p8, %p785_p9  ;;  %s638_s2 = scalar_lea.vmem %s637_s30, 1024 }
  0x33   : > { %v178_v6 = vadd.s32 1, %v508_v5  ;;  %v216_v30 = vshll.u32 %v176_v10, 8  ;;  %p639_p0 = scmp.lt.s32.totalorder %s851_s23, %s637_s30  ;;  %p640_p1 = scmp.lt.s32.totalorder %s638_s2, %s632_s29 }
  0x34   : > { %p635_p12 = pneg %p634_p11 }
  0x35   : > { %vm179_vm0 = vcmp.gt.s32.totalorder %v178_v6, 0  ;;  %p641_p2 = por %p640_p1, %p639_p0 }
  0x36   : > { %v180_v8 = vsel %vm179_vm0, %v178_v6, 0 }
  0x37   : > { %v182_v9 = vand.u32 31, %v180_v8  ;;  %v181_v11 = vshrl.u32 %v180_v8, 5  ;;  %p642_p3 = pnand %p641_p2, %p635_p12 }
  0x39   : > { %v183_v12 = vsub.s32 32, %v182_v9  ;;  %v185_v14 = vshll.u32 %v715_v13, %v182_v9  ;;  %v188_v16 = vshll.u32 %v716_v15, %v182_v9  ;;  %v191_v18 = vshll.u32 %v717_v17, %v182_v9 }
  0x3a   : > { %v194_v20 = vshll.u32 %v718_v19, %v182_v9  ;;  %v197_v22 = vshll.u32 %v719_v21, %v182_v9  ;;  %vm200_vm1 = vcmp.lt.s32.totalorder %v181_v11, 1  ;;  %vm203_vm2 = vcmp.lt.s32.totalorder %v181_v11, 4 }
  0x3b   : > { %v184_v23 = vshrl.u32 %v715_v13, %v183_v12  ;;  %v186_v24 = vshrl.u32 %v716_v15, %v183_v12  ;;  %v189_v25 = vshrl.u32 %v717_v17, %v183_v12  ;;  %v192_v26 = vshrl.u32 %v718_v19, %v183_v12 }
  0x3c   : > { %v195_v27 = vshrl.u32 %v719_v21, %v183_v12  ;;  %v198_v29 = vshrl.u32 %v720_v28, %v183_v12  ;;  %vm201_vm3 = vcmp.lt.s32.totalorder %v181_v11, 2  ;;  %vm202_vm4 = vcmp.lt.s32.totalorder %v181_v11, 3 }
  0x3d   : > { %v187_v31 = vor.u32 %v186_v24, %v185_v14  ;;  %v190_v32 = vor.u32 %v189_v25, %v188_v16  ;;  %v193_v33 = vor.u32 %v192_v26, %v191_v18 }
  0x3e   : > { %v196_v34 = vor.u32 %v195_v27, %v194_v20  ;;  %v199_v35 = vor.u32 %v198_v29, %v197_v22 }
  0x3f   : > { %v204_v36 = vsel %vm200_vm1, %v184_v23, %v187_v31  ;;  %v205_v37 = vsel %vm203_vm2, %v193_v33, 2102212464  ;;  %v208_v38 = vsel %vm200_vm1, %v187_v31, %v190_v32  ;;  %v212_v39 = vsel %vm200_vm1, %v190_v32, %v193_v33 }
  0x40   : > { %v206_v40 = vsel %vm202_vm4, %v190_v32, %v205_v37  ;;  %v209_v41 = vsel %vm203_vm2, %v196_v34, 920167782  ;;  %v213_v42 = vsel %vm203_vm2, %v199_v35, 1326507024 }
  0x41   : > { %v210_v43 = vsel %vm202_vm4, %v193_v33, %v209_v41  ;;  %v214_v44 = vsel %vm202_vm4, %v196_v34, %v213_v42  ;;  %v207_v45 = vsel %vm201_vm3, %v204_v36, %v206_v40 }
  0x42   : > { %v211_v46 = vsel %vm201_vm3, %v208_v38, %v210_v43  ;;  %v215_v47 = vsel %vm201_vm3, %v212_v39, %v214_v44  ;;  %v223_v52 = vmul.u32 %v216_v30, %v207_v45 }
  0x43   : > { %v834_v48 = vmul.u32.u64.low %v216_v30, %v215_v47  ;;  %v835_v49 = vmul.u32.u64.high %v216_v30, %v215_v47, %v834_v48  ;;  %v837_v50 = vmul.u32.u64.low %v216_v30, %v211_v46  ;;  %v838_v51 = vmul.u32.u64.high %v216_v30, %v211_v46, %v837_v50 }
  0x45   : > { %vm225_vm5 = vc.u32 %v835_v49, %v837_v50  ;;  %v226_v53 = vadd.s32 1, %v838_v51  ;;  %v224_v0 = vadd.s32 %v837_v50, %v835_v49 }
  0x47   : > { %v227_v54 = vsel %vm225_vm5, %v226_v53, %v838_v51 }
  0x48   : > { %v228_v55 = vadd.s32 %v227_v54, %v223_v52 }
  0x4a   : > { %v229_v56 = vadd.s32 536870912, %v228_v55 }
  0x4c   : > { %v230_v57 = vshrl.u32 %v229_v56, 30 }
  0x4e   : > { %v231_v58 = vshll.u32 %v230_v57, 30  ;;  %v254_v15 = vsub.s32 4, %v230_v57 }
  0x50   : > { %v232_v59 = vsub.s32 %v228_v55, %v231_v58  ;;  %v255_v18 = vsel %vm170_vm7, %v254_v15, %v230_v57 }
  0x51   : > { %v257_v20 = vsel %vm169_vm8, 0, %v255_v18 }
  0x52   : > { %v234_v60 = vsub.s32 0, %v232_v59  ;;  %v261_v21 = vadd.s32 3, %v257_v20  ;;  %v365_v23 = vand.u32 3, %v257_v20 }
  0x54   : > { %v509_v61 = vmin.u32 %v234_v60, %v232_v59  ;;  %v262_v22 = vand.u32 3, %v261_v21  ;;  %vm370_vm10 = vcmp.eq.s32.totalorder %v365_v23, 2  ;;  %vm367_vm12 = vcmp.eq.s32.totalorder %v365_v23, 0 }
  0x55   : > { %vm366_vm14 = vcmp.lt.s32.totalorder %v365_v23, 2 }
  0x56   : > { %v236_v62 = vclz %v509_v61  ;;  %vm267_vm9 = vcmp.eq.s32.totalorder %v262_v22, 2  ;;  %vm264_vm11 = vcmp.eq.s32.totalorder %v262_v22, 0  ;;  %vm263_vm13 = vcmp.lt.s32.totalorder %v262_v22, 2 }
  0x58   : > { %v510_v63 = vadd.s32 4294967294, %v236_v62 }
  0x5a   : > { %vm511_vm6 = vcmp.lt.s32.totalorder %v510_v63, 0 }
  0x5b   : > { %v239_v2 = vsel %vm511_vm6, 0, %v510_v63 }
  0x5c   : > { %v240_v3 = vsub.s32 32, %v239_v2  ;;  %v241_v5 = vshll.u32 %v232_v59, %v239_v2  ;;  %v244_v6 = vsub.s32 4294967266, %v239_v2 }
  0x5e   : > { %v242_v7 = vshrl.u32 %v224_v0, %v240_v3  ;;  %v245_v8 = vadd.s32 127, %v244_v6 }
  0x60   : > { %v243_v9 = vor.u32 %v242_v7, %v241_v5  ;;  %v246_v10 = vshll.u32 %v245_v8, 23 }
  0x62   : > { %v247_v11 = vor.u32 4788187, %v246_v10  ;;  %v250_v12 = vcvt.s32.f32 %v243_v9 }
  0x64   : > { %v248_v13 = vand.u32 2147483647, %v247_v11 }
  0x66   : > { %v251_v14 = vmul.f32 %v250_v12, %v248_v13 }
  0x68   : > { %v252_v16 = vxor.u32 2147483648, %v251_v14 }
  0x6a   : > { %v253_v17 = vsel %vm170_vm7, %v252_v16, %v251_v14 }
  0x6b   : > { %v256_v19 = vsel %vm169_vm8, %v828_v1, %v253_v17 }
  0x6c   : > { %600 = vcosq.f32 %v256_v19 }
  0x6d   : > { %602 = vsinq.f32 %v256_v19 }
  0x79   : > { %v601_v24 = vpop.eup %600 }
  0x7a   : > { %v603_v25 = vpop.eup %602  ;;  %v268_v26 = vxor.u32 2147483648, %v601_v24 }
  0x7b   : > { %v265_v4 = vxor.u32 2147483648, %v603_v25 }
  0x7c   : > { %v269_v27 = vsel %vm267_vm9, %v268_v26, %v603_v25  ;;  %v372_v28 = vsel %vm370_vm10, %v268_v26, %v603_v25 }
  0x7d   : > { %v266_v29 = vsel %vm264_vm11, %v601_v24, %v265_v4  ;;  %v369_v30 = vsel %vm367_vm12, %v601_v24, %v265_v4 }
  0x7e   : > { %v270_v31 = vsel %vm263_vm13, %v266_v29, %v269_v27  ;;  %v373_v32 = vsel %vm366_vm14, %v369_v30, %v372_v28 }
  0x7f   : > { %v271_v33 = vsel %vm260_vm15, nan, %v270_v31  ;;  %v374_v34 = vsel %vm260_vm15, nan, %v373_v32 }
  0x80   : > { %375 = vst [vmem:[%s163_s22] sm:$0xff] %v271_v33  ;;  %v378_v35 = vmul.f32 2.0, %v271_v33  ;;  %516 = vst [vmem:[%s163_s22 + $0x10] sm:$0xff] %v374_v34 }
  0x82   : > { %v380_v36 = vmul.f32 %v378_v35, %v271_v33  ;;  %v379_v37 = vmul.f32 %v378_v35, %v374_v34 }
  0x84   : > { %517 = vst [vmem:[%s163_s22 + $0x8] sm:$0xff] %v379_v37  ;;  %v381_v1 = vsub.f32 1.0, %v380_v36 }
  0x86   : > { %518 = vst [vmem:[%s163_s22 + $0x18] sm:$0xff] %v381_v1 }
  0x87   : > { %645 = shalt.err (!%p642_p3)
}
  0x88   : > { %s646_s3 = scalar_lea.hbm %s856_s27, 512  ;;  %s650_s12 = scalar_lea.hbm %s905_s1, 1024 }
  0x89   : > { %p647_p5 = scmp.ne.s32.totalorder %s856_s27, %s646_s3  ;;  %p651_p10 = scmp.lt.s32.totalorder %s856_s27, %s905_s1 }
  0x8a   : > { %p652_p4 = scmp.lt.s32.totalorder %s650_s12, %s646_s3 }
  0x8b   : > { %p648_p6 = pnand %p647_p5, %p785_p9 }
  0x8c   : > { %p653_p13 = por %p652_p4, %p651_p10 }
  0x8d   : > { %p649_p7 = pneg %p648_p6 }
  0x8f   : > { %p654_p8 = pnand %p653_p13, %p649_p7 }
  0x91   : > { %657 = shalt.err (!%p654_p8)
}
  0x92   : > { %s722_s17 = smov 128   ;;  %s723_s18 = smov 8  }
  0x93   : > { %532 = dma.vmem_to_hbm [thread:$0]  (%p785_p9), %s851_s23, 512, %s856_s27, %s387_s28, %s722_s17, %s722_s17, %s723_s18  }
  0x94 PF: > { %s419_s22 = sand.u32 1, %s692_s6   ;;  %p911_p11 = scmp.ne.s32.totalorder %s909_s21, 0 }
  0x95   : > { %p912_p12 = scmp.ge.s32.totalorder %s712_s11, 2  ;;  %s420_s24 = scalar_lea.sflag [#allocation4], %s419_s22 }
  0x97   : > { %p539_p0 = pnand %p912_p12, %p911_p11 }
  0x99   : > { %p540_p1 = pneg %p539_p0 }
  0x9b   : > { %687 = dma.done.wait (%p540_p1), %s420_s24, 512  }
  0x9c   : > { %689 = vsyncadd (%p540_p1), %s420_s24, 4294966784  ;;  %s17_s11 = sadd.s32 1, %s712_s11   ;;  %s913_s6 = smov %s696_s7 }
  0x9d   : > { %p14_p2 = scmp.ge.s32.totalorder %s17_s11, 4   ;;  %s914_s7 = smov %s700_s8 }
  0x9e   : > { %s915_s8 = smov %s790_s20  ;;  %s916_s9 = smov %s708_s10 }
  0x9f   : > { %s917_s10 = smov %s919_s14  ;;  %16 = sbr.rel (!%p14_p2) target bundleno = 6 (0x6), region = 72 }
  0xa4   :  { %425 = vsyncpa [#allocation3], 1 }
  0xa5   :  { %427 = vsyncpa [#allocation3 + $0x1], 1 }
  0xa6   :  { %428 = vsyncpa [#allocation4], 1 }
  0xa7   :  { %430 = vsyncpa [#allocation4 + $0x1], 1 }

</bundles_post_ra>
